<compile_context>
chip_gen: v7x
topology: tpu7x:2x2x1
jax: 0.10.0
libtpu: 0.0.40
codegen_flags: <defaults>
</compile_context>

<pallas_src>
import jax
import jax.numpy as jnp
from jax.experimental import pallas as pl
from jax.experimental.pallas import tpu as pltpu

_EPS = 1e-5


def _pick_channel_block(C):
    """Sublane (channel) block: a multiple of 8 dividing C, else the full extent."""
    if C % 8 == 0:
        for cb in (128, 64, 32, 16, 8):
            if cb <= C and C % cb == 0:
                return cb
    return C  # full-extent block is always legal


def _pick_lane_tile(L, target=2048):
    """Lane tile: largest multiple of 128 that divides L and is <= target, else full L."""
    if L % 128 == 0:
        for mult in range(target // 128, 0, -1):
            tl = 128 * mult
            if L % tl == 0:
                return tl
    return L  # full-extent block is always legal


def _stats_kernel(x_ref, sum_ref, sumsq_ref):
    # x_ref: (Cb, TL).  sum_ref / sumsq_ref: (Cb, 1) accumulators resident in
    # VMEM across the (N, L-tile) reduction axes (same output block index).
    @pl.when(jnp.logical_and(pl.program_id(1) == 0, pl.program_id(2) == 0))
    def _():
        sum_ref[...] = jnp.zeros_like(sum_ref)
        sumsq_ref[...] = jnp.zeros_like(sumsq_ref)

    x = x_ref[...].astype(jnp.float32)
    sum_ref[...] += jnp.sum(x, axis=-1, keepdims=True)
    sumsq_ref[...] += jnp.sum(x * x, axis=-1, keepdims=True)


def _apply_kernel(x_ref, scale_ref, shift_ref, o_ref):
    # x_ref/o_ref: (Cb, TL); scale_ref/shift_ref: (Cb, 1).  y = x*scale + shift.
    x = x_ref[...].astype(jnp.float32)
    o_ref[...] = (x * scale_ref[...] + shift_ref[...]).astype(o_ref.dtype)


@jax.jit
def _bn2d_pallas(x_ncl, gamma, beta):
    """x_ncl: (N, C, L) with L = H*W; gamma/beta: (C, 1) float32."""
    N, C, L = x_ncl.shape
    Cb = _pick_channel_block(C)
    TL = _pick_lane_tile(L)
    grid = (C // Cb, N, L // TL)

    # Batch dim squeezed out of the kernel block; channels on sublanes, L on lanes.
    x_block = pl.BlockSpec((None, Cb, TL), lambda cb, n, l: (n, cb, l))
    cvec_block = pl.BlockSpec((Cb, 1), lambda cb, n, l: (cb, 0))

    # ---- Pass 1: per-channel sum and sum-of-squares over (N, H, W) ----------
    sums, sumsqs = pl.pallas_call(
        _stats_kernel,
        out_shape=(
            jax.ShapeDtypeStruct((C, 1), jnp.float32),
            jax.ShapeDtypeStruct((C, 1), jnp.float32),
        ),
        grid_spec=pltpu.PrefetchScalarGridSpec(
            num_scalar_prefetch=0,
            grid=grid,
            in_specs=[x_block],
            out_specs=[cvec_block, cvec_block],
        ),
        compiler_params=pltpu.CompilerParams(
            dimension_semantics=("parallel", "arbitrary", "arbitrary")),
    )(x_ncl)

    # Tiny (C,1) math between passes: fused per-channel scale/shift.
    # Single-pass var = E[x^2] - mean^2 in f32 (biased, matching train-mode BN);
    # a two-pass centered variance would cost one extra read of x but be
    # numerically safer for data with a very large mean.
    count = jnp.float32(N * L)
    mean = sums / count
    var = jnp.maximum(sumsqs / count - mean * mean, 0.0)
    scale = gamma.astype(jnp.float32) * jax.lax.rsqrt(var + _EPS)
    shift = beta.astype(jnp.float32) - mean * scale

    # ---- Pass 2: streamed elementwise y = x*scale + shift -------------------
    y = pl.pallas_call(
        _apply_kernel,
        out_shape=jax.ShapeDtypeStruct((N, C, L), x_ncl.dtype),
        grid_spec=pltpu.PrefetchScalarGridSpec(
            num_scalar_prefetch=0,
            grid=grid,
            in_specs=[x_block, cvec_block, cvec_block],
            out_specs=x_block,
        ),
        compiler_params=pltpu.CompilerParams(
            dimension_semantics=("parallel", "parallel", "arbitrary")),
    )(x_ncl, scale, shift)
    return y


class TripleBN2dPallas:
    """Pallas equivalent of TripleBN2d: three per-channel affine BN branches."""

    def __init__(self, num_features):
        self.num_features = num_features
        # Deterministic (synthetic) parameters, one set per branch (c, r, a).
        c = jnp.arange(num_features, dtype=jnp.float32)
        self.params = []
        for b in range(3):  # 0 -> BN_c, 1 -> BN_r, 2 -> BN_a
            gamma = (1.0 + 0.1 * c + 0.05 * b).reshape(num_features, 1)
            beta = (0.01 * c - 0.02 * b).reshape(num_features, 1)
            self.params.append((gamma, beta))

    def __call__(self, x_nchw, idx):
        assert idx in (0, 1, 2), "idx not in (0,1,2)"
        N, C, H, W = x_nchw.shape
        assert C == self.num_features
        gamma, beta = self.params[idx]
        x_ncl = x_nchw.reshape(N, C, H * W)  # free reshape, no HBM transpose
        y_ncl = _bn2d_pallas(x_ncl, gamma, beta)
        return y_ncl.reshape(N, C, H, W)


def _reference_bn(x_nchw, gamma, beta):
    """Pure-JAX reference of training-mode BatchNorm2d."""
    mean = jnp.mean(x_nchw, axis=(0, 2, 3), keepdims=True)
    var = jnp.mean((x_nchw - mean) ** 2, axis=(0, 2, 3), keepdims=True)
    g = gamma.reshape(1, -1, 1, 1)
    b = beta.reshape(1, -1, 1, 1)
    return (x_nchw - mean) * jax.lax.rsqrt(var + _EPS) * g + b


if __name__ == "__main__":
    key = jax.random.PRNGKey(0)
    N, C, H, W = 2, 4, 16, 16
    x = jax.random.normal(key, (N, C, H, W), dtype=jnp.float32)

    mod = TripleBN2dPallas(C)

    for idx in (0, 1, 2):
        y = mod(x, idx)
        y = jax.block_until_ready(y)
        ref = _reference_bn(x, *mod.params[idx])
        assert y.shape == (N, C, H, W)
        assert jnp.max(jnp.abs(y - ref)) < 5e-4, f"mismatch on branch {idx}"

    print("KERNEL_OK")
</pallas_src>

<mosaic_0001>
module attributes {stable_mosaic.version = 11 : i64} {
  func.func @_stats_kernel(%arg0: i32, %arg1: i32, %arg2: i32, %arg3: memref<1x4x256xf32, #tpu.memory_space<vmem>>, %arg4: memref<4x1xf32, #tpu.memory_space<vmem>>, %arg5: memref<4x1xf32, #tpu.memory_space<vmem>>) attributes {dimension_semantics = [#tpu.dimension_semantics<parallel>, #tpu.dimension_semantics<arbitrary>, #tpu.dimension_semantics<arbitrary>], iteration_bounds = array<i64: 1, 2, 1>, scalar_prefetch = 0 : i64, scratch_operands = 0 : i64, tpu.core_type = #tpu.core_type<tc>, window_params = [{transform_indices = @transform_0, window_bounds = array<i64: 1, 4, 256>}, {transform_indices = @transform_1, window_bounds = array<i64: 4, 1>}, {transform_indices = @transform_2, window_bounds = array<i64: 4, 1>}]} {
    %c0_i32 = arith.constant 0 : i32
    %0 = arith.cmpi eq, %arg1, %c0_i32 : i32
    %c0_i32_0 = arith.constant 0 : i32
    %1 = arith.cmpi eq, %arg2, %c0_i32_0 : i32
    %2 = arith.andi %0, %1 : i1
    %3 = arith.extui %2 : i1 to i32
    %c0_i32_1 = arith.constant 0 : i32
    %4 = arith.cmpi ne, %3, %c0_i32_1 : i32
    scf.if %4 {
      %cst_13 = arith.constant 0.000000e+00 : f32
      %18 = vector.broadcast %cst_13 : f32 to vector<4x1xf32>
      %c0_14 = arith.constant 0 : index
      %c0_15 = arith.constant 0 : index
      %19 = vector.load %arg4[%c0_14, %c0_15] : memref<4x1xf32, #tpu.memory_space<vmem>>, vector<4x1xf32>
      tpu.vector_store %arg4[%c0_14, %c0_15], %18 {strides = array<i32>} : memref<4x1xf32, #tpu.memory_space<vmem>>, vector<4x1xf32>,
      %cst_16 = arith.constant 0.000000e+00 : f32
      %20 = vector.broadcast %cst_16 : f32 to vector<4x1xf32>
      %c0_17 = arith.constant 0 : index
      %c0_18 = arith.constant 0 : index
      %21 = vector.load %arg5[%c0_17, %c0_18] : memref<4x1xf32, #tpu.memory_space<vmem>>, vector<4x1xf32>
      tpu.vector_store %arg5[%c0_17, %c0_18], %20 {strides = array<i32>} : memref<4x1xf32, #tpu.memory_space<vmem>>, vector<4x1xf32>,
    } else {
    }
    %c0 = arith.constant 0 : index
    %c0_2 = arith.constant 0 : index
    %c0_3 = arith.constant 0 : index
    %5 = vector.load %arg3[%c0, %c0_2, %c0_3] : memref<1x4x256xf32, #tpu.memory_space<vmem>>, vector<1x4x256xf32>
    %6 = vector.shape_cast %5 : vector<1x4x256xf32> to vector<4x256xf32>
    %c0_4 = arith.constant 0 : index
    %c0_5 = arith.constant 0 : index
    %7 = vector.load %arg4[%c0_4, %c0_5] : memref<4x1xf32, #tpu.memory_space<vmem>>, vector<4x1xf32>
    %cst = arith.constant dense<0.000000e+00> : vector<4xf32>
    %8 = vector.multi_reduction <add>, %6, %cst [1] : vector<4x256xf32> to vector<4xf32>
    %9 = vector.shape_cast %8 : vector<4xf32> to vector<4x1xf32>
    %10 = arith.addf %7, %9 : vector<4x1xf32>
    %c0_6 = arith.constant 0 : index
    %c0_7 = arith.constant 0 : index
    %11 = vector.load %arg4[%c0_6, %c0_7] : memref<4x1xf32, #tpu.memory_space<vmem>>, vector<4x1xf32>
    tpu.vector_store %arg4[%c0_6, %c0_7], %10 {strides = array<i32>} : memref<4x1xf32, #tpu.memory_space<vmem>>, vector<4x1xf32>,
    %c0_8 = arith.constant 0 : index
    %c0_9 = arith.constant 0 : index
    %12 = vector.load %arg5[%c0_8, %c0_9] : memref<4x1xf32, #tpu.memory_space<vmem>>, vector<4x1xf32>
    %13 = arith.mulf %6, %6 : vector<4x256xf32>
    %cst_10 = arith.constant dense<0.000000e+00> : vector<4xf32>
    %14 = vector.multi_reduction <add>, %13, %cst_10 [1] : vector<4x256xf32> to vector<4xf32>
    %15 = vector.shape_cast %14 : vector<4xf32> to vector<4x1xf32>
    %16 = arith.addf %12, %15 : vector<4x1xf32>
    %c0_11 = arith.constant 0 : index
    %c0_12 = arith.constant 0 : index
    %17 = vector.load %arg5[%c0_11, %c0_12] : memref<4x1xf32, #tpu.memory_space<vmem>>, vector<4x1xf32>
    tpu.vector_store %arg5[%c0_11, %c0_12], %16 {strides = array<i32>} : memref<4x1xf32, #tpu.memory_space<vmem>>, vector<4x1xf32>,
    return
  }
  func.func @transform_0(%arg0: i32, %arg1: i32, %arg2: i32) -> (i32, i32, i32) {
    %c0_i32 = arith.constant 0 : i32
    return %arg1, %arg0, %arg2 : i32, i32, i32
  }
  func.func @transform_1(%arg0: i32, %arg1: i32, %arg2: i32) -> (i32, i32) {
    %c0_i32 = arith.constant 0 : i32
    %c0_i32_0 = arith.constant 0 : i32
    return %arg0, %c0_i32 : i32, i32
  }
  func.func @transform_2(%arg0: i32, %arg1: i32, %arg2: i32) -> (i32, i32) {
    %c0_i32 = arith.constant 0 : i32
    %c0_i32_0 = arith.constant 0 : i32
    return %arg0, %c0_i32 : i32, i32
  }
}

module attributes {stable_mosaic.version = 11 : i64} {
  func.func @_apply_kernel(%arg0: i32, %arg1: i32, %arg2: i32, %arg3: memref<1x4x256xf32, #tpu.memory_space<vmem>>, %arg4: memref<4x1xf32, #tpu.memory_space<vmem>>, %arg5: memref<4x1xf32, #tpu.memory_space<vmem>>, %arg6: memref<1x4x256xf32, #tpu.memory_space<vmem>>) attributes {dimension_semantics = [#tpu.dimension_semantics<parallel>, #tpu.dimension_semantics<parallel>, #tpu.dimension_semantics<arbitrary>], iteration_bounds = array<i64: 1, 2, 1>, scalar_prefetch = 0 : i64, scratch_operands = 0 : i64, tpu.core_type = #tpu.core_type<tc>, window_params = [{transform_indices = @transform_0, window_bounds = array<i64: 1, 4, 256>}, {transform_indices = @transform_1, window_bounds = array<i64: 4, 1>}, {transform_indices = @transform_2, window_bounds = array<i64: 4, 1>}, {transform_indices = @transform_3, window_bounds = array<i64: 1, 4, 256>}]} {
    %c0 = arith.constant 0 : index
    %c0_0 = arith.constant 0 : index
    %c0_1 = arith.constant 0 : index
    %0 = vector.load %arg3[%c0, %c0_0, %c0_1] : memref<1x4x256xf32, #tpu.memory_space<vmem>>, vector<1x4x256xf32>
    %1 = vector.shape_cast %0 : vector<1x4x256xf32> to vector<4x256xf32>
    %c0_2 = arith.constant 0 : index
    %c0_3 = arith.constant 0 : index
    %2 = vector.load %arg4[%c0_2, %c0_3] : memref<4x1xf32, #tpu.memory_space<vmem>>, vector<4x1xf32>
    %3 = vector.broadcast %2 : vector<4x1xf32> to vector<4x256xf32>
    %4 = arith.mulf %1, %3 : vector<4x256xf32>
    %c0_4 = arith.constant 0 : index
    %c0_5 = arith.constant 0 : index
    %5 = vector.load %arg5[%c0_4, %c0_5] : memref<4x1xf32, #tpu.memory_space<vmem>>, vector<4x1xf32>
    %6 = vector.broadcast %5 : vector<4x1xf32> to vector<4x256xf32>
    %7 = arith.addf %4, %6 : vector<4x256xf32>
    %c0_6 = arith.constant 0 : index
    %c0_7 = arith.constant 0 : index
    %c0_8 = arith.constant 0 : index
    %8 = vector.load %arg6[%c0_6, %c0_7, %c0_8] : memref<1x4x256xf32, #tpu.memory_space<vmem>>, vector<1x4x256xf32>
    %9 = vector.shape_cast %8 : vector<1x4x256xf32> to vector<4x256xf32>
    %10 = vector.shape_cast %7 : vector<4x256xf32> to vector<1x4x256xf32>
    tpu.vector_store %arg6[%c0_6, %c0_7, %c0_8], %10 {strides = array<i32>} : memref<1x4x256xf32, #tpu.memory_space<vmem>>, vector<1x4x256xf32>,
    return
  }
  func.func @transform_0(%arg0: i32, %arg1: i32, %arg2: i32) -> (i32, i32, i32) {
    %c0_i32 = arith.constant 0 : i32
    return %arg1, %arg0, %arg2 : i32, i32, i32
  }
  func.func @transform_1(%arg0: i32, %arg1: i32, %arg2: i32) -> (i32, i32) {
    %c0_i32 = arith.constant 0 : i32
    %c0_i32_0 = arith.constant 0 : i32
    return %arg0, %c0_i32 : i32, i32
  }
  func.func @transform_2(%arg0: i32, %arg1: i32, %arg2: i32) -> (i32, i32) {
    %c0_i32 = arith.constant 0 : i32
    %c0_i32_0 = arith.constant 0 : i32
    return %arg0, %c0_i32 : i32, i32
  }
  func.func @transform_3(%arg0: i32, %arg1: i32, %arg2: i32) -> (i32, i32, i32) {
    %c0_i32 = arith.constant 0 : i32
    return %arg1, %arg0, %arg2 : i32, i32, i32
  }
}

</mosaic_0001>

<bundles_post_ra>
// kernel: _bn2d_pallas.3
= control target key start
LH: loop header
LB: loop body
LE: loop exit
PB: predicated region body
PF: predicated region fallthrough
CT: control target
= control target key end

     0   :  { %8 = vsyncpa [#allocation3], 0  ;;  %s719_s0 = inlined_call_operand.vmem [shape: f32[2,4,256], index: 0, kind: input, shape index: {}]   ;;  %s720_s1 = inlined_call_operand.vmem [shape: f32[4,1], index: 1, kind: input, shape index: {}]   ;;  %s721_s2 = inlined_call_operand.vmem [shape: f32[4,1], index: 2, kind: input, shape index: {}]   ;;  %s722_s3 = inlined_call_operand.hbm [shape: f32[2,4,256], index: 3, kind: output, shape index: {}]  }
   0x1   :  { %10 = vsyncpa [#allocation3 + $0x1], 0  ;;  %s601_s12 = smov 0   ;;  %s603_s13 = smov 0  }
   0x2   :  { %s605_s14 = smov 0   ;;  %s607_s15 = smov 0  }
   0x3   :  { %s609_s16 = smov 0   ;;  %s611_s17 = smov 0  }
   0x4 LB: > { %s423_s18 = sadd.s32 4294967295, %s576_s17   ;;  %s424_s19 = sadd.s32 4294967294, %s576_s17   ;;  %s576_s17 = sphi %s611_s17, %s16_s17   ;;  %s572_s16 = sphi %s609_s16, %s729_s16   ;;  %s568_s15 = sphi %s607_s15, %s728_s15   ;;  %s564_s14 = sphi %s605_s14, %s727_s14   ;;  %s560_s13 = sphi %s603_s13, %s726_s13   ;;  %s556_s12 = sphi %s601_s12, %s725_s12  }
   0x5   : > { %s31_s20 = sadd.s32 1, %s572_s16  ;;  %s128_s21 = sadd.s32 1, %s564_s14 }
   0x6   : > { %p33_p0 = scmp.ge.s32.totalorder %s31_s20, 2  ;;  %p138_p1 = scmp.ne.s32.totalorder %s564_s14, %s560_s13 }
   0x7   : > { %p139_p2 = scmp.eq.s32.totalorder %s423_s18, 1  ;;  %p144_p3 = scmp.ne.s32.totalorder %s560_s13, %s556_s12 }
   0x8   : > { %s731_s20 = smov (%p33_p0, %s31_s20), 0  ;;  %p145_p5 = scmp.eq.s32.totalorder %s424_s19, 1 }
   0x9   : > { %p641_p4 = por %p139_p2, %p138_p1  ;;  %s121_s23 = ssub.s32 %s572_s16, %s731_s20 }
   0xa   : > { %p429_p6 = scmp.ge.s32.totalorder %s576_s17, 1  ;;  %p126_p7 = scmp.eq.s32.totalorder %s121_s23, 0 }
   0xb   : > { %p648_p8 = por %p145_p5, %p144_p3  ;;  %p194_p9 = scmp.lt.s32.totalorder %s576_s17, 3 }
   0xc   : > { %s654_s25 = scalar_select %p126_p7, %s564_s14, %s128_s21  }
   0xd   : > { %p195_p10 = pnand %p429_p6, %p194_p9 }
   0xe   : > { %v258_v0 = vld [vmem:[%s720_s1] sm:$0xf] (!%p195_p10)  ;;  %v578_v1 = vmov (!%p195_p10), 0   ;;  %p235_p11 = scmp.lt.s32.totalorder (!%p195_p10), %s568_s15, 1  ;;  %v579_v3 = vmov (!%p195_p10), 839922192   ;;  %v266_v5 = vlaneseq (!%p195_p10) }
   0xf   : > { %198 = sbr.rel (%p195_p10) target bundleno = 166 (0xa6), region = 32  ;;  %497 = vset.pattern.permute.xlu0 (!%p195_p10), %v578_v1  ;;  %v272_v2 = vld [vmem:[%s721_s2] sm:$0xf] (!%p195_p10)  ;;  %v264_v4 = vunpack.c.l.s4 (!%p195_p10), %v579_v3  ;;  %s231_s4 = sand.u32 (!%p195_p10), 1, %s560_s13  }
  0x10   : > { %261 = vperm.xlu0 (!%p195_p10), %497, %v258_v0   ;;  %v267_v7 = vshrl.u32 (!%p195_p10), %v266_v5, 7  ;;  %s430_s6 = sshll.u32 (!%p195_p10), %s231_s4, 3  ;;  %s439_s10 = sshll.u32 (!%p195_p10), %s568_s15, 7 }
  0x11   : > { %v265_v6 = vunpack.c.0.s8 (!%p195_p10), %v264_v4  ;;  %s233_s11 = scalar_lea.vmem (!%p195_p10), [#allocation2], %s430_s6  ;;  %s672_s23 = scalar_lea.hbm (!%p195_p10), %s722_s3, %s439_s10 }
  0x12   : > { %s306_s18 = sshll.u32 (!%p195_p10), %s233_s11, 4  ;;  %s288_s26 = scalar_lea.sflag (!%p195_p10), [#allocation3], %s231_s4  ;;  %s674_s18 = int_to_ptr.vmem [resolvable:$true] %s306_s18 }
  0x13   : > { %v268_v8 = vsub.s32 (!%p195_p10), %v265_v6, %v267_v7  ;;  %s498_s27 = scalar_lea.vmem (!%p195_p10), %s674_s18, 128 }
  0x14   : > { %275 = vperm.xlu0 (!%p195_p10), %497, %v272_v2   ;;  %p499_p12 = scmp.ne.s32.totalorder (!%p195_p10), %s674_s18, %s498_s27 }
  0x16   : > { %s236_s30 = scalar_select %p235_p11, %s568_s15, 1 }
  0x17   : > { %p500_p13 = pnand %p499_p12, %p641_p4  ;;  %s580_s15 = smov [#allocation2]  }
  0x18   : > { %s438_s5 = sshll.u32 %s236_s30, 3  ;;  %s502_s28 = sshll.u32 %s580_s15, 4  ;;  %s503_s28 = int_to_ptr.vmem [resolvable:$false] %s502_s28 }
  0x19   : > { %s246_s9 = scalar_lea.vmem %s719_s0, %s438_s5  ;;  %p501_p0 = pneg %p500_p13 }
  0x1a   : > { %v257_v11 = vld [vmem:[%s246_s9] sm:$0xff]  ;;  %s504_s29 = scalar_lea.vmem %s503_s28, 256  ;;  %p505_p1 = scmp.lt.s32.totalorder %s674_s18, %s503_s28 }
  0x1b   : > { %p506_p2 = scmp.lt.s32.totalorder %s504_s29, %s498_s27 }
  0x1d   : > { %p507_p3 = por %p506_p2, %p505_p1 }
  0x1f   : > { %p508_p5 = pnand %p507_p3, %p501_p0 }
  0x8f   : > { %v262_v9 = vpop.permute.xlu0 %261 }
  0x90   : > { %v269_v10 = vrot.slane %v262_v9, %v268_v8 }
  0x92   : > { %v271_v13 = vmul.f32 %v269_v10, %v257_v11 }
  0x93   : > { %v276_v12 = vpop.permute.xlu0 %275 }
  0x94   : > { %v283_v14 = vrot.slane %v276_v12, %v268_v8 }
  0x96   : > { %v285_v15 = vadd.f32 %v283_v14, %v271_v13 }
  0x98   : > { %286 = vst [vmem:[%s233_s11] sm:$0xff] %v285_v15 }
  0x99   : > { %511 = shalt.err (!%p508_p5)
}
  0x9a   : > { %s512_s30 = scalar_lea.hbm %s672_s23, 128  ;;  %s516_s6 = scalar_lea.hbm %s722_s3, 256 }
  0x9b   : > { %p513_p6 = scmp.ne.s32.totalorder %s672_s23, %s512_s30  ;;  %p517_p10 = scmp.lt.u32.totalorder %s672_s23, %s722_s3 }
  0x9c   : > { %p518_p11 = scmp.lt.u32.totalorder %s516_s6, %s512_s30  ;;  %p520_p13 = scmp.lt.u32.totalorder %s512_s30, %s672_s23 }
  0x9d   : > { %p514_p7 = pnand %p513_p6, %p641_p4 }
  0x9e   : > { %p519_p12 = por %p518_p11, %p517_p10 }
  0x9f   : > { %p515_p9 = pneg %p514_p7 }
  0xa0   : > { %p521_p0 = por %p520_p13, %p519_p12 }
  0xa2   : > { %p522_p1 = pnand %p521_p0, %p515_p9 }
  0xa4   : > { %525 = shalt.err (!%p522_p1)
}
  0xa5   : > { %440 = dma.vmem_to_hbm [thread:$0]  (%p641_p4), %s674_s18, 128, %s672_s23, %s288_s26  }
  0xa6 PF: > { %p446_p2 = scmp.ge.s32.totalorder %s576_s17, 2  ;;  %s318_s9 = sand.u32 1, %s556_s12  }
  0xa7   : > { %s319_s10 = scalar_lea.sflag [#allocation3], %s318_s9 }
  0xa8   : > { %p443_p3 = pnand %p446_p2, %p648_p8 }
  0xaa   : > { %551 = dma.done.wait (!%p443_p3), %s319_s10, 128  }
  0xab   : > { %553 = vsyncadd (!%p443_p3), %s319_s10, 4294967168  ;;  %s16_s17 = sadd.s32 1, %s576_s17   ;;  %s725_s12 = smov %s560_s13 }
  0xac   : > { %p13_p5 = scmp.ge.s32.totalorder %s16_s17, 4   ;;  %s726_s13 = smov %s564_s14 }
  0xad   : > { %s727_s14 = smov %s654_s25  ;;  %s728_s15 = smov %s572_s16 }
  0xae   : > { %s729_s16 = smov %s731_s20  ;;  %15 = sbr.rel (!%p13_p5) target bundleno = 4 (0x4), region = 73 }
  0xb5   :  { %324 = vsyncpa [#allocation3], 1 }
  0xb6   :  { %326 = vsyncpa [#allocation3 + $0x1], 1 }

// kernel: _bn2d_pallas.2
= control target key start
LH: loop header
LB: loop body
LE: loop exit
PB: predicated region body
PF: predicated region fallthrough
CT: control target
= control target key end

     0   :  { %s418_s9 = smov 0   ;;  %s420_s10 = smov 0   ;;  %s466_s0 = inlined_call_operand.vmem [shape: f32[2,4,256], index: 0, kind: input, shape index: {}]   ;;  %s467_s1 = inlined_call_operand.vmem [shape: f32[4,1], index: 1, kind: output, shape index: {0}]   ;;  %s468_s2 = inlined_call_operand.vmem [shape: f32[4,1], index: 2, kind: output, shape index: {1}]  }
   0x1   :  { %s422_s11 = smov 0  }
   0x2 LB: > { %s28_s12 = sadd.s32 1, %s396_s10  ;;  %p342_p0 = scmp.ge.s32.totalorder %s400_s11, 1  ;;  %s400_s11 = sphi %s422_s11, %s13_s11   ;;  %s396_s10 = sphi %s420_s10, %s470_s10   ;;  %s392_s9 = sphi %s418_s9, %s469_s9  }
   0x3   : > { %p30_p1 = scmp.ge.s32.totalorder %s28_s12, 2  ;;  %p147_p2 = scmp.lt.s32.totalorder %s400_s11, 3 }
   0x5   : > { %s472_s12 = smov (%p30_p1, %s28_s12), 0  ;;  %p148_p3 = pnand %p342_p0, %p147_p2 }
   0x6   : > { %p181_p4 = scmp.lt.s32.totalorder (!%p148_p3), %s392_s9, 1  ;;  %p202_p5 = scmp.eq.s32.totalorder (!%p148_p3), %s392_s9, 0 }
   0x7   : > { %151 = sbr.rel (%p148_p3) target bundleno = 176 (0xb0), region = 24 }
   0xe   : > { %s474_s9 = smov (!%p181_p4, %s392_s9), 1  ;;  %207 = sbr.rel (!%p202_p5) target bundleno = 21 (0x15), region = 28 }
   0xf   : > { %s350_s13 = sshll.u32 %s474_s9, 3  ;;  %vm208_vm0 = vcmask (%p202_p5), 3072   ;;  %v402_v0 = vmov (%p202_p5), 0.0  }
  0x10   : > { %s192_s16 = scalar_lea.vmem %s466_s0, %s350_s13  ;;  %209 = vst.msk [vmem:[%s467_s1] sm:$0xf] (%p202_p5), %vm208_vm0, %v402_v0  ;;  %210 = vst.msk [vmem:[%s468_s2] sm:$0xf] (%p202_p5), %vm208_vm0, %v402_v0 }
  0x15 PF: > { %v211_v1 = vld [vmem:[%s192_s16] sm:$0xff]  ;;  %vm216_vm1 = vcmask 1043456   ;;  %vm223_vm2 = vcmask 3072  }
  0x16   : > { %v214_v2 = vcombine.high %v211_v1, %v211_v1  ;;  %v217_v3 = vsel %vm216_vm1, %v211_v1, 0.0  ;;  %v226_v4 = vmul.f32 %v211_v1, %v211_v1 }
  0x17   : > { %v212_v11 = vld [vmem:[%s467_s1] sm:$0xf] }
  0x18   : > { %v218_v5 = vsel %vm216_vm1, %v214_v2, 0.0  ;;  %v228_v6 = vcombine.high %v226_v4, %v226_v4  ;;  %v230_v7 = vsel %vm216_vm1, %v226_v4, 0.0  ;;  %v225_v14 = vld [vmem:[%s468_s2] sm:$0xf] }
  0x19   : > { %v219_v8 = vadd.f32 %v218_v5, %v217_v3 }
  0x1a   : > { %v231_v9 = vsel %vm216_vm1, %v228_v6, 0.0 }
  0x1b   : > { %220 = vadd.xlane.f32.xlu0 %v219_v8  ;;  %v232_v10 = vadd.f32 %v231_v9, %v230_v7 }
  0x1f   : > { %233 = vadd.xlane.f32.xlu0 %v232_v10 }
  0xa8   : > { %v221_v12 = vpop.xlane.xlu0 %220 }
  0xa9   : > { %v222_v13 = vadd.f32 %v221_v12, %v212_v11 }
  0xab   : > { %224 = vst.msk [vmem:[%s467_s1] sm:$0xf] %vm223_vm2, %v222_v13 }
  0xac   : > { %v234_v15 = vpop.xlane.xlu0 %233 }
  0xad   : > { %v235_v16 = vadd.f32 %v234_v15, %v225_v14 }
  0xaf   : > { %236 = vst.msk [vmem:[%s468_s2] sm:$0xf] %vm223_vm2, %v235_v16 }
  0xb0 PF: > { %s13_s11 = sadd.s32 1, %s400_s11   ;;  %s469_s9 = smov %s396_s10 }
  0xb1   : > { %p10_p6 = scmp.ge.s32.totalorder %s13_s11, 4   ;;  %s470_s10 = smov %s472_s12 }
  0xb3   :  { %12 = sbr.rel (!%p10_p6) target bundleno = 2 (0x2), region = 70 }

</bundles_post_ra>
